<compile_context>
chip_gen: v5e
topology: v5e:2x2
jax: 0.10.0
libtpu: 0.0.40
codegen_flags: <defaults>
</compile_context>

<pallas_src>
import functools

import jax
import jax.numpy as jnp
from jax.experimental import pallas as pl
from jax.experimental.pallas import tpu as pltpu


def _round_up(x, m):
    return (x + m - 1) // m * m


def linear_kernel(x_ref, wt_ref, b_ref, o_ref):
    # y = x @ W_T + b.  W_T is already [K, N] (pre-transposed in the wrapper),
    # so this is a single MXU matmul + VPU bias add, with a 128-lane-dense
    # output tile (unmasked stores).
    y = jnp.dot(x_ref[...], wt_ref[...], preferred_element_type=jnp.float32)
    o_ref[...] = (y + b_ref[...]).astype(o_ref.dtype)


@functools.partial(jax.jit, static_argnames=("block_b",))
def simple_policy_forward(x, weight, bias, *, block_b=256):
    """PyTorch nn.Linear forward: y = x @ weight.T + bias.

    x: [B, D_in] f32; weight: [D_out, D_in] f32 (PyTorch layout); bias: [D_out] f32.
    """
    B, D_in = x.shape
    D_out = weight.shape[0]

    # Wrapper-side layout plumbing (free relative to kernel cost):
    #  1) pre-transpose weight -> [K, N] so the MXU contraction needs no
    #     in-kernel transpose,
    #  2) zero-pad K and N to 128 multiples for lane-dense loads/stores
    #     (zeros contribute nothing to the dot / bias add),
    #  3) pad the batch to a multiple of the batch tile so many rows share one
    #     call and per-grid-step overhead is amortized.
    Kp = _round_up(D_in, 128)
    Np = _round_up(D_out, 128)
    tile_b = min(block_b, _round_up(B, 8))   # sublane-aligned batch tile
    Bp = _round_up(B, tile_b)

    x_p = jnp.pad(x, ((0, Bp - B), (0, Kp - D_in)))                 # [Bp, Kp]
    wt_p = jnp.pad(weight.T, ((0, Kp - D_in), (0, Np - D_out)))     # [Kp, Np]
    b_p = jnp.pad(bias, (0, Np - D_out)).reshape(1, Np)             # [1,  Np]

    out_p = pl.pallas_call(
        linear_kernel,
        out_shape=jax.ShapeDtypeStruct((Bp, Np), x.dtype),
        grid_spec=pl.GridSpec(
            grid=(Bp // tile_b,),
            in_specs=[
                pl.BlockSpec((tile_b, Kp), lambda i: (i, 0)),  # batch tile of x
                pl.BlockSpec((Kp, Np), lambda i: (0, 0)),      # resident weight
                pl.BlockSpec((1, Np), lambda i: (0, 0)),       # resident bias
            ],
            out_specs=pl.BlockSpec((tile_b, Np), lambda i: (i, 0)),
        ),
        compiler_params=pltpu.CompilerParams(
            # batch tiles are independent -> megacore split on v7x, pipelined DMA
            dimension_semantics=("parallel",),
        ),
    )(x_p, wt_p, b_p)

    return out_p[:B, :D_out]


if __name__ == "__main__":
    # Small shapes consistent with the module: batch=8, input_dim=32, output_dim=16
    B, D_in, D_out = 8, 32, 16
    key = jax.random.PRNGKey(0)
    kx, kw, kb = jax.random.split(key, 3)

    # Deterministic parameter init (PyTorch nn.Linear default: U(-1/sqrt(in), 1/sqrt(in)))
    bound = 1.0 / jnp.sqrt(jnp.float32(D_in))
    weight = jax.random.uniform(kw, (D_out, D_in), jnp.float32, -bound, bound)
    bias = jax.random.uniform(kb, (D_out,), jnp.float32, -bound, bound)
    x = jax.random.normal(kx, (B, D_in), jnp.float32)

    out = simple_policy_forward(x, weight, bias)
    out = jax.block_until_ready(out)

    # Reference check against plain JAX
    ref = x @ weight.T + bias
    assert out.shape == (B, D_out)
    assert jnp.allclose(out, ref, atol=1e-5, rtol=1e-5), "mismatch vs reference"

    print("KERNEL_OK")
</pallas_src>

<mosaic_0001>
module attributes {stable_mosaic.version = 11 : i64} {
  func.func @linear_kernel(%arg0: i32, %arg1: memref<8x128xf32, #tpu.memory_space<vmem>>, %arg2: memref<128x128xf32, #tpu.memory_space<vmem>>, %arg3: memref<1x128xf32, #tpu.memory_space<vmem>>, %arg4: memref<8x128xf32, #tpu.memory_space<vmem>>) attributes {dimension_semantics = [#tpu.dimension_semantics<parallel>], iteration_bounds = array<i64: 1>, scalar_prefetch = 0 : i64, scratch_operands = 0 : i64, tpu.core_type = #tpu.core_type<tc>, window_params = [{transform_indices = @transform_0, window_bounds = array<i64: 8, 128>}, {pipeline_mode = #tpu.pipeline_mode<synchronous>, transform_indices = @transform_1, window_bounds = array<i64: 128, 128>}, {pipeline_mode = #tpu.pipeline_mode<synchronous>, transform_indices = @transform_2, window_bounds = array<i64: 1, 128>}, {transform_indices = @transform_3, window_bounds = array<i64: 8, 128>}]} {
    %c0 = arith.constant 0 : index
    %c0_0 = arith.constant 0 : index
    %0 = vector.load %arg1[%c0, %c0_0] : memref<8x128xf32, #tpu.memory_space<vmem>>, vector<8x128xf32>
    %c0_1 = arith.constant 0 : index
    %c0_2 = arith.constant 0 : index
    %1 = vector.load %arg2[%c0_1, %c0_2] : memref<128x128xf32, #tpu.memory_space<vmem>>, vector<128x128xf32>
    %cst = arith.constant dense<0.000000e+00> : vector<8x128xf32>
    %2 = tpu.matmul %0, %1, %cst {dimension_numbers = #tpu.dot_dimension_numbers<[1], [0], [0], [1], [0, 0, 1, 1], [], []>} : vector<8x128xf32>, vector<128x128xf32>, vector<8x128xf32> -> vector<8x128xf32>
    %c0_3 = arith.constant 0 : index
    %c0_4 = arith.constant 0 : index
    %3 = vector.load %arg3[%c0_3, %c0_4] : memref<1x128xf32, #tpu.memory_space<vmem>>, vector<1x128xf32>
    %4 = vector.broadcast %3 : vector<1x128xf32> to vector<8x128xf32>
    %5 = arith.addf %2, %4 : vector<8x128xf32>
    %c0_5 = arith.constant 0 : index
    %c0_6 = arith.constant 0 : index
    %6 = vector.load %arg4[%c0_5, %c0_6] : memref<8x128xf32, #tpu.memory_space<vmem>>, vector<8x128xf32>
    tpu.vector_store %arg4[%c0_5, %c0_6], %5 {strides = array<i32>} : memref<8x128xf32, #tpu.memory_space<vmem>>, vector<8x128xf32>,
    return
  }
  func.func @transform_0(%arg0: i32) -> (i32, i32) {
    %c0_i32 = arith.constant 0 : i32
    %c0_i32_0 = arith.constant 0 : i32
    return %arg0, %c0_i32 : i32, i32
  }
  func.func @transform_1(%arg0: i32) -> (i32, i32) {
    %c0_i32 = arith.constant 0 : i32
    %c0_i32_0 = arith.constant 0 : i32
    %c0_i32_1 = arith.constant 0 : i32
    return %c0_i32, %c0_i32_0 : i32, i32
  }
  func.func @transform_2(%arg0: i32) -> (i32, i32) {
    %c0_i32 = arith.constant 0 : i32
    %c0_i32_0 = arith.constant 0 : i32
    %c0_i32_1 = arith.constant 0 : i32
    return %c0_i32, %c0_i32_0 : i32, i32
  }
  func.func @transform_3(%arg0: i32) -> (i32, i32) {
    %c0_i32 = arith.constant 0 : i32
    %c0_i32_0 = arith.constant 0 : i32
    return %arg0, %c0_i32 : i32, i32
  }
}

</mosaic_0001>

<bundles_post_ra>
// kernel: simple_policy_forward.1
= control target key start
LH: loop header
LB: loop body
LE: loop exit
PB: predicated region body
PF: predicated region fallthrough
CT: control target
= control target key end

     0   :  { %s179_s0 = inlined_call_operand.vmem [shape: f32[8,128], index: 0, kind: input, shape index: {}]   ;;  %s180_s1 = inlined_call_operand.vmem [shape: f32[128,128], index: 1, kind: input, shape index: {}]   ;;  %s181_s2 = inlined_call_operand.vmem [shape: f32[1,128], index: 2, kind: input, shape index: {}]   ;;  %s182_s3 = inlined_call_operand.hbm [shape: f32[8,128], index: 3, kind: output, shape index: {}]  }
   0x1   :  { %v31_v0 = vld [vmem:[%s180_s1 + $0x78] sm:$0xff]  ;;  %v30_v1 = vld [vmem:[%s180_s1 + $0x70] sm:$0xff]  ;;  %v29_v2 = vld [vmem:[%s180_s1 + $0x68] sm:$0xff] }
   0x2   :  { %36 = vmatpush.msra.mxu0 %v31_v0  ;;  %v28_v3 = vld [vmem:[%s180_s1 + $0x60] sm:$0xff]  ;;  %v27_v4 = vld [vmem:[%s180_s1 + $0x58] sm:$0xff] }
   0x4   :  { %37 = vmatpush.msra.mxu0 %v30_v1 }
   0x6   :  { %38 = vmatpush.msra.mxu0 %v29_v2 }
   0x7   :  { %8 = vsyncpa [#allocation3], 0  ;;  %v26_v5 = vld [vmem:[%s180_s1 + $0x50] sm:$0xff]  ;;  %v25_v6 = vld [vmem:[%s180_s1 + $0x48] sm:$0xff]  ;;  %s101_s21 = smov [#allocation2]   ;;  %s64_s25 = sshll.u32 %s182_s3, 4  ;;  %s65_s25 = int_to_ptr.hbm [resolvable:$true] %s64_s25 }
   0x8   :  { %39 = vmatpush.msra.mxu0 %v28_v3  ;;  %v24_v7 = vld [vmem:[%s180_s1 + $0x40] sm:$0xff]  ;;  %v23_v8 = vld [vmem:[%s180_s1 + $0x38] sm:$0xff]  ;;  %v22_v9 = vld [vmem:[%s180_s1 + $0x30] sm:$0xff]  ;;  %s62_s22 = sshll.u32 %s101_s21, 4  ;;  %s63_s22 = int_to_ptr.vmem [resolvable:$true] %s62_s22 }
   0x9   :  { %v21_v10 = vld [vmem:[%s180_s1 + $0x28] sm:$0xff]  ;;  %v20_v11 = vld [vmem:[%s180_s1 + $0x20] sm:$0xff]  ;;  %v19_v12 = vld [vmem:[%s180_s1 + $0x18] sm:$0xff] }
   0xa   :  { %40 = vmatpush.msra.mxu0 %v27_v4  ;;  %v18_v13 = vld [vmem:[%s180_s1 + $0x10] sm:$0xff]  ;;  %v17_v14 = vld [vmem:[%s180_s1 + $0x8] sm:$0xff]  ;;  %v16_v15 = vld [vmem:[%s180_s1] sm:$0xff] }
   0xb   :  { %v15_v16 = vld [vmem:[%s179_s0] sm:$0xff] }
   0xc   :  { %41 = vmatpush.msra.mxu0 %v26_v5  ;;  %v74_v17 = vld [vmem:[%s181_s2] ss:$0 sm:$0xff] }
   0xe   :  { %42 = vmatpush.msra.mxu0 %v25_v6 }
  0x10   :  { %43 = vmatpush.msra.mxu0 %v24_v7 }
  0x12   :  { %44 = vmatpush.msra.mxu0 %v23_v8 }
  0x14   :  { %45 = vmatpush.msra.mxu0 %v22_v9 }
  0x16   :  { %46 = vmatpush.msra.mxu0 %v21_v10 }
  0x18   :  { %47 = vmatpush.msra.mxu0 %v20_v11 }
  0x1a   :  { %48 = vmatpush.msra.mxu0 %v19_v12 }
  0x1c   :  { %49 = vmatpush.msra.mxu0 %v18_v13 }
  0x1e   :  { %50 = vmatpush.msra.mxu0 %v17_v14 }
  0x20   :  { %51 = vmatpush.msra.mxu0 %v16_v15 }
  0x21   :  { %52 = vmatmul.f32.vlgmr.msra.gmra.mxu0 %v15_v16 }
  0x9e   :  { %v53_v18 = vpop.f32.mrf.mxu0 }
  0x9f   :  { %v54_v19 = vadd.f32 %v74_v17, %v53_v18 }
  0xa1   :  { %56 = vst [vmem:[#allocation2] sm:$0xff] %v54_v19 }
  0xa2   :  { %67 = dma.vmem_to_hbm [thread:$0]  %s63_s22, 128, %s65_s25, [#allocation3]  }
  0xa3   :  { %99 = dma.done.wait [#allocation3], 128  }
  0xa4   :  { %100 = vsyncadd [#allocation3], 4294967168 }
  0xa5   :  { %72 = vsyncpa [#allocation3], 1 }

</bundles_post_ra>
